<compile_context>
chip_gen: v7x
topology: tpu7x:2x2x1
jax: 0.10.0
libtpu: 0.0.40
codegen_flags: <defaults>
</compile_context>

<pallas_src>
import functools

import jax
import jax.numpy as jnp
from jax.experimental import pallas as pl
from jax.experimental.pallas import tpu as pltpu


def _layernorm(x, gamma, beta, eps=1e-6):
    mean = jnp.mean(x, axis=-1, keepdims=True)
    var = jnp.mean((x - mean) ** 2, axis=-1, keepdims=True)
    return (x - mean) * jax.lax.rsqrt(var + eps) * gamma + beta


def encoder_layer_kernel(
    x_ref,                      # (1, S, D)
    wqkv_ref,                   # (D, 3D)   bf16  (Wq|Wk|Wv fused)
    wo_ref,                     # (D, D)    bf16
    ln1_g_ref, ln1_b_ref,       # (1, D)    f32
    w1_ref, b1_ref,             # (D, Dh) bf16, (1, Dh) f32
    w2_ref, b2_ref,             # (Dh, D) bf16, (1, D)  f32
    ln2_g_ref, ln2_b_ref,       # (1, D)    f32
    out_ref,                    # (1, S, D)
    *, n_head,
):
    x = x_ref[0]                                 # (S, D)
    S, D = x.shape
    d_k = D // n_head
    scale = 1.0 / (float(d_k) ** 0.5)
    mm_dtype = wqkv_ref.dtype                    # bf16 MXU operand dtype

    xf = x.astype(jnp.float32)                   # f32 copy for residual / LayerNorm

    # --- fused QKV projection: one MXU pass with N = 3D ----------------------
    qkv = jnp.dot(x.astype(mm_dtype), wqkv_ref[...],
                  preferred_element_type=jnp.float32)          # (S, 3D) f32
    q = qkv[:, 0:D] * scale                      # fold 1/sqrt(d_k) into q
    k = qkv[:, D:2 * D]
    v = qkv[:, 2 * D:3 * D]

    # --- head-batched self attention ------------------------------------------
    def split_heads(t):                          # (S, D) -> (H, S, d_k)
        return jnp.stack(
            [t[:, h * d_k:(h + 1) * d_k] for h in range(n_head)], axis=0)

    qh = split_heads(q).astype(mm_dtype)
    kh = split_heads(k).astype(mm_dtype)
    vh = split_heads(v).astype(mm_dtype)

    # contract last axes directly (no explicit k-transpose)
    s = jnp.einsum("hqd,hkd->hqk", qh, kh,
                   preferred_element_type=jnp.float32)         # (H, S, S) f32
    s = s - jnp.max(s, axis=-1, keepdims=True)
    p = jnp.exp(s)
    p = p * pl.reciprocal(jnp.sum(p, axis=-1, keepdims=True), approx=True)
    o = jnp.einsum("hqk,hkd->hqd", p.astype(mm_dtype), vh,
                   preferred_element_type=jnp.float32)         # (H, S, d_k) f32

    # merge heads back to a lane-dense (S, D) slab; ONE full-K output projection
    o_m = jnp.concatenate([o[h] for h in range(n_head)], axis=-1)     # (S, D)
    proj = jnp.dot(o_m.astype(mm_dtype), wo_ref[...],
                   preferred_element_type=jnp.float32)                # (S, D)

    # dropout (eval) -> identity ; residual ; post-LayerNorm
    y1 = _layernorm(proj + xf, ln1_g_ref[...], ln1_b_ref[...])

    # --- position-wise feed-forward -------------------------------------------
    h1 = jnp.dot(y1.astype(mm_dtype), w1_ref[...],
                 preferred_element_type=jnp.float32) + b1_ref[...]
    h1 = jnp.maximum(h1, 0.0)
    h2 = jnp.dot(h1.astype(mm_dtype), w2_ref[...],
                 preferred_element_type=jnp.float32) + b2_ref[...]
    y2 = _layernorm(h2 + y1, ln2_g_ref[...], ln2_b_ref[...])

    out_ref[0] = y2.astype(out_ref.dtype)


def encoder_layer(x, params, *, n_head, weight_dtype=jnp.bfloat16):
    B, S, D = x.shape
    Dh = params["w1"].shape[1]

    # Fuse Q/K/V weights into one (D, 3D) matrix; store all matmul weights in bf16.
    wqkv = jnp.concatenate(
        [params["wq"], params["wk"], params["wv"]], axis=1).astype(weight_dtype)
    wo = params["wo"].astype(weight_dtype)
    w1 = params["w1"].astype(weight_dtype)
    w2 = params["w2"].astype(weight_dtype)

    full2d = lambda r, c: pl.BlockSpec((r, c), lambda b: (0, 0))

    # Advisory cost estimate for XLA scheduling around the custom call.
    itemsize = jnp.dtype(x.dtype).itemsize
    flops = 2 * B * S * D * (4 * D + 2 * S + 2 * Dh)
    transcendentals = B * n_head * S * S
    bytes_accessed = (
        2 * B * S * D * itemsize                                  # x in, out
        + (wqkv.size + wo.size + w1.size + w2.size) * 2           # bf16 weights
        + (4 * D + Dh) * 4                                        # biases + LN params (f32)
    )

    return pl.pallas_call(
        functools.partial(encoder_layer_kernel, n_head=n_head),
        out_shape=jax.ShapeDtypeStruct((B, S, D), x.dtype),
        grid_spec=pltpu.PrefetchScalarGridSpec(
            num_scalar_prefetch=0,
            grid=(B,),                       # one batch element per grid step (parallel)
            in_specs=[
                pl.BlockSpec((1, S, D), lambda b: (b, 0, 0)),   # x
                full2d(D, 3 * D),  # wqkv
                full2d(D, D),      # wo
                full2d(1, D),      # ln1 gamma
                full2d(1, D),      # ln1 beta
                full2d(D, Dh),     # w1
                full2d(1, Dh),     # b1
                full2d(Dh, D),     # w2
                full2d(1, D),      # b2
                full2d(1, D),      # ln2 gamma
                full2d(1, D),      # ln2 beta
            ],
            out_specs=pl.BlockSpec((1, S, D), lambda b: (b, 0, 0)),
        ),
        compiler_params=pltpu.CompilerParams(
            dimension_semantics=("parallel",),
            vmem_limit_bytes=64 * 1024 * 1024,
        ),
        cost_estimate=pl.CostEstimate(
            flops=flops,
            transcendentals=transcendentals,
            bytes_accessed=bytes_accessed,
        ),
    )(
        x, wqkv, wo,
        params["ln1_g"], params["ln1_b"],
        w1, params["b1"], w2, params["b2"],
        params["ln2_g"], params["ln2_b"],
    )


def encoder_layer_ref(x, params, *, n_head):
    """Pure-JAX f32 reference for correctness check."""
    B, S, D = x.shape
    d_k = D // n_head
    q = x @ params["wq"]
    k = x @ params["wk"]
    v = x @ params["wv"]

    def split(t):  # (B, S, D) -> (B, H, S, d_k)
        return t.reshape(B, S, n_head, d_k).transpose(0, 2, 1, 3)

    qh, kh, vh = split(q), split(k), split(v)
    scores = jnp.einsum("bhqd,bhkd->bhqk", qh, kh) / (d_k ** 0.5)
    p = jax.nn.softmax(scores, axis=-1)
    o = jnp.einsum("bhqk,bhkd->bhqd", p, vh)
    o = o.transpose(0, 2, 1, 3).reshape(B, S, D)
    proj = o @ params["wo"]

    def ln(t, g, b, eps=1e-6):
        m = jnp.mean(t, axis=-1, keepdims=True)
        var = jnp.mean((t - m) ** 2, axis=-1, keepdims=True)
        return (t - m) / jnp.sqrt(var + eps) * g + b

    y1 = ln(proj + x, params["ln1_g"][0], params["ln1_b"][0])
    h = jax.nn.relu(y1 @ params["w1"] + params["b1"][0])
    y2 = ln(h @ params["w2"] + params["b2"][0] + y1,
            params["ln2_g"][0], params["ln2_b"][0])
    return y2


def init_params(key, d_model, d_hidden):
    ks = jax.random.split(key, 6)
    std = 0.02
    return {
        "wq": jax.random.normal(ks[0], (d_model, d_model), jnp.float32) * std,
        "wk": jax.random.normal(ks[1], (d_model, d_model), jnp.float32) * std,
        "wv": jax.random.normal(ks[2], (d_model, d_model), jnp.float32) * std,
        "wo": jax.random.normal(ks[3], (d_model, d_model), jnp.float32) * std,
        "ln1_g": jnp.ones((1, d_model), jnp.float32),
        "ln1_b": jnp.zeros((1, d_model), jnp.float32),
        "w1": jax.random.normal(ks[4], (d_model, d_hidden), jnp.float32) * std,
        "b1": jnp.zeros((1, d_hidden), jnp.float32),
        "w2": jax.random.normal(ks[5], (d_hidden, d_model), jnp.float32) * std,
        "b2": jnp.zeros((1, d_model), jnp.float32),
        "ln2_g": jnp.ones((1, d_model), jnp.float32),
        "ln2_b": jnp.zeros((1, d_model), jnp.float32),
    }


if __name__ == "__main__":
    B, S, D = 2, 8, 32           # batch, seq, d_model
    n_head = 4
    d_hidden = 2 * D

    key = jax.random.PRNGKey(0)
    k_x, k_p = jax.random.split(key)
    x = jax.random.normal(k_x, (B, S, D), jnp.float32)
    params = init_params(k_p, D, d_hidden)

    out = encoder_layer(x, params, n_head=n_head)
    out = jax.block_until_ready(out)

    ref = encoder_layer_ref(x, params, n_head=n_head)
    assert out.shape == (B, S, D)
    # bf16 MXU weights + approximate EUP reciprocal loosen the match vs. the f32 reference.
    assert jnp.allclose(out, ref, atol=1e-2, rtol=1e-2), "mismatch vs reference"

    print("KERNEL_OK")
</pallas_src>

<mosaic_0001>
module attributes {stable_mosaic.version = 11 : i64} {
  func.func @encoder_layer_kernel(%arg0: i32, %arg1: memref<1x8x32xf32, #tpu.memory_space<vmem>>, %arg2: memref<32x96xbf16, #tpu.memory_space<vmem>>, %arg3: memref<32x32xbf16, #tpu.memory_space<vmem>>, %arg4: memref<1x32xf32, #tpu.memory_space<vmem>>, %arg5: memref<1x32xf32, #tpu.memory_space<vmem>>, %arg6: memref<32x64xbf16, #tpu.memory_space<vmem>>, %arg7: memref<1x64xf32, #tpu.memory_space<vmem>>, %arg8: memref<64x32xbf16, #tpu.memory_space<vmem>>, %arg9: memref<1x32xf32, #tpu.memory_space<vmem>>, %arg10: memref<1x32xf32, #tpu.memory_space<vmem>>, %arg11: memref<1x32xf32, #tpu.memory_space<vmem>>, %arg12: memref<1x8x32xf32, #tpu.memory_space<vmem>>) attributes {dimension_semantics = [#tpu.dimension_semantics<parallel>], iteration_bounds = array<i64: 2>, scalar_prefetch = 0 : i64, scratch_operands = 0 : i64, tpu.core_type = #tpu.core_type<tc>, window_params = [{transform_indices = @transform_0, window_bounds = array<i64: 1, 8, 32>}, {pipeline_mode = #tpu.pipeline_mode<synchronous>, transform_indices = @transform_1, window_bounds = array<i64: 32, 96>}, {pipeline_mode = #tpu.pipeline_mode<synchronous>, transform_indices = @transform_2, window_bounds = array<i64: 32, 32>}, {pipeline_mode = #tpu.pipeline_mode<synchronous>, transform_indices = @transform_3, window_bounds = array<i64: 1, 32>}, {pipeline_mode = #tpu.pipeline_mode<synchronous>, transform_indices = @transform_4, window_bounds = array<i64: 1, 32>}, {pipeline_mode = #tpu.pipeline_mode<synchronous>, transform_indices = @transform_5, window_bounds = array<i64: 32, 64>}, {pipeline_mode = #tpu.pipeline_mode<synchronous>, transform_indices = @transform_6, window_bounds = array<i64: 1, 64>}, {pipeline_mode = #tpu.pipeline_mode<synchronous>, transform_indices = @transform_7, window_bounds = array<i64: 64, 32>}, {pipeline_mode = #tpu.pipeline_mode<synchronous>, transform_indices = @transform_8, window_bounds = array<i64: 1, 32>}, {pipeline_mode = #tpu.pipeline_mode<synchronous>, transform_indices = @transform_9, window_bounds = array<i64: 1, 32>}, {pipeline_mode = #tpu.pipeline_mode<synchronous>, transform_indices = @transform_10, window_bounds = array<i64: 1, 32>}, {transform_indices = @transform_11, window_bounds = array<i64: 1, 8, 32>}]} {
    %c0 = arith.constant 0 : index
    %c0_0 = arith.constant 0 : index
    %c0_1 = arith.constant 0 : index
    %0 = vector.load %arg1[%c0, %c0_0, %c0_1] : memref<1x8x32xf32, #tpu.memory_space<vmem>>, vector<1x8x32xf32>
    %1 = vector.shape_cast %0 : vector<1x8x32xf32> to vector<8x32xf32>
    %2 = arith.truncf %1 : vector<8x32xf32> to vector<8x32xbf16>
    %c0_2 = arith.constant 0 : index
    %c0_3 = arith.constant 0 : index
    %3 = vector.load %arg2[%c0_2, %c0_3] : memref<32x96xbf16, #tpu.memory_space<vmem>>, vector<32x96xbf16>
    %cst = arith.constant dense<0.000000e+00> : vector<8x96xf32>
    %4 = tpu.matmul %2, %3, %cst {dimension_numbers = #tpu.dot_dimension_numbers<[1], [0], [0], [1], [0, 0, 1, 1], [], []>} : vector<8x32xbf16>, vector<32x96xbf16>, vector<8x96xf32> -> vector<8x96xf32>
    %5 = vector.extract_strided_slice %4 {offsets = [0, 0], sizes = [8, 32], strides = [1, 1]} : vector<8x96xf32> to vector<8x32xf32>
    %cst_4 = arith.constant 0.353553385 : f32
    %6 = vector.broadcast %cst_4 : f32 to vector<8x32xf32>
    %7 = arith.mulf %5, %6 : vector<8x32xf32>
    %8 = vector.extract_strided_slice %4 {offsets = [0, 32], sizes = [8, 32], strides = [1, 1]} : vector<8x96xf32> to vector<8x32xf32>
    %9 = vector.extract_strided_slice %4 {offsets = [0, 64], sizes = [8, 32], strides = [1, 1]} : vector<8x96xf32> to vector<8x32xf32>
    %10 = vector.extract_strided_slice %7 {offsets = [0, 0], sizes = [8, 8], strides = [1, 1]} : vector<8x32xf32> to vector<8x8xf32>
    %11 = vector.extract_strided_slice %7 {offsets = [0, 8], sizes = [8, 8], strides = [1, 1]} : vector<8x32xf32> to vector<8x8xf32>
    %12 = vector.extract_strided_slice %7 {offsets = [0, 16], sizes = [8, 8], strides = [1, 1]} : vector<8x32xf32> to vector<8x8xf32>
    %13 = vector.extract_strided_slice %7 {offsets = [0, 24], sizes = [8, 8], strides = [1, 1]} : vector<8x32xf32> to vector<8x8xf32>
    %14 = vector.shape_cast %10 : vector<8x8xf32> to vector<1x8x8xf32>
    %15 = vector.shape_cast %11 : vector<8x8xf32> to vector<1x8x8xf32>
    %16 = vector.shape_cast %12 : vector<8x8xf32> to vector<1x8x8xf32>
    %17 = vector.shape_cast %13 : vector<8x8xf32> to vector<1x8x8xf32>
    %18 = tpu.concatenate %14, %15, %16, %17 in 0 : vector<1x8x8xf32>, vector<1x8x8xf32>, vector<1x8x8xf32>, vector<1x8x8xf32> -> vector<4x8x8xf32>
    %19 = arith.truncf %18 : vector<4x8x8xf32> to vector<4x8x8xbf16>
    %20 = vector.extract_strided_slice %8 {offsets = [0, 0], sizes = [8, 8], strides = [1, 1]} : vector<8x32xf32> to vector<8x8xf32>
    %21 = vector.extract_strided_slice %8 {offsets = [0, 8], sizes = [8, 8], strides = [1, 1]} : vector<8x32xf32> to vector<8x8xf32>
    %22 = vector.extract_strided_slice %8 {offsets = [0, 16], sizes = [8, 8], strides = [1, 1]} : vector<8x32xf32> to vector<8x8xf32>
    %23 = vector.extract_strided_slice %8 {offsets = [0, 24], sizes = [8, 8], strides = [1, 1]} : vector<8x32xf32> to vector<8x8xf32>
    %24 = vector.shape_cast %20 : vector<8x8xf32> to vector<1x8x8xf32>
    %25 = vector.shape_cast %21 : vector<8x8xf32> to vector<1x8x8xf32>
    %26 = vector.shape_cast %22 : vector<8x8xf32> to vector<1x8x8xf32>
    %27 = vector.shape_cast %23 : vector<8x8xf32> to vector<1x8x8xf32>
    %28 = tpu.concatenate %24, %25, %26, %27 in 0 : vector<1x8x8xf32>, vector<1x8x8xf32>, vector<1x8x8xf32>, vector<1x8x8xf32> -> vector<4x8x8xf32>
    %29 = arith.truncf %28 : vector<4x8x8xf32> to vector<4x8x8xbf16>
    %30 = vector.extract_strided_slice %9 {offsets = [0, 0], sizes = [8, 8], strides = [1, 1]} : vector<8x32xf32> to vector<8x8xf32>
    %31 = vector.extract_strided_slice %9 {offsets = [0, 8], sizes = [8, 8], strides = [1, 1]} : vector<8x32xf32> to vector<8x8xf32>
    %32 = vector.extract_strided_slice %9 {offsets = [0, 16], sizes = [8, 8], strides = [1, 1]} : vector<8x32xf32> to vector<8x8xf32>
    %33 = vector.extract_strided_slice %9 {offsets = [0, 24], sizes = [8, 8], strides = [1, 1]} : vector<8x32xf32> to vector<8x8xf32>
    %34 = vector.shape_cast %30 : vector<8x8xf32> to vector<1x8x8xf32>
    %35 = vector.shape_cast %31 : vector<8x8xf32> to vector<1x8x8xf32>
    %36 = vector.shape_cast %32 : vector<8x8xf32> to vector<1x8x8xf32>
    %37 = vector.shape_cast %33 : vector<8x8xf32> to vector<1x8x8xf32>
    %38 = tpu.concatenate %34, %35, %36, %37 in 0 : vector<1x8x8xf32>, vector<1x8x8xf32>, vector<1x8x8xf32>, vector<1x8x8xf32> -> vector<4x8x8xf32>
    %39 = arith.truncf %38 : vector<4x8x8xf32> to vector<4x8x8xbf16>
    "tpu.trace_start"() <{level = 10 : i32, message = "hqd,hkd->hqk"}> : () -> ()
    %cst_5 = arith.constant dense<0.000000e+00> : vector<4x8x8xf32>
    %40 = tpu.matmul %19, %29, %cst_5 {dimension_numbers = #tpu.dot_dimension_numbers<[2], [2], [1], [1], [0, 0, 0, 1, 1, 1], [0], [0]>} : vector<4x8x8xbf16>, vector<4x8x8xbf16>, vector<4x8x8xf32> -> vector<4x8x8xf32>
    "tpu.trace_stop"() : () -> ()
    %cst_6 = arith.constant dense<0xFF800000> : vector<4x8xf32>
    %41 = vector.multi_reduction <maximumf>, %40, %cst_6 [2] : vector<4x8x8xf32> to vector<4x8xf32>
    %42 = vector.shape_cast %41 : vector<4x8xf32> to vector<4x8x1xf32>
    %43 = vector.broadcast %42 : vector<4x8x1xf32> to vector<4x8x8xf32>
    %44 = arith.subf %40, %43 : vector<4x8x8xf32>
    %45 = math.exp %44 : vector<4x8x8xf32>
    %cst_7 = arith.constant dense<0.000000e+00> : vector<4x8xf32>
    %46 = vector.multi_reduction <add>, %45, %cst_7 [2] : vector<4x8x8xf32> to vector<4x8xf32>
    %47 = vector.shape_cast %46 : vector<4x8xf32> to vector<4x8x1xf32>
    %48 = tpu.reciprocal %47 {approx = true} : vector<4x8x1xf32> -> vector<4x8x1xf32>
    %49 = vector.broadcast %48 : vector<4x8x1xf32> to vector<4x8x8xf32>
    %50 = arith.mulf %45, %49 : vector<4x8x8xf32>
    %51 = arith.truncf %50 : vector<4x8x8xf32> to vector<4x8x8xbf16>
    "tpu.trace_start"() <{level = 10 : i32, message = "hqk,hkd->hqd"}> : () -> ()
    %cst_8 = arith.constant dense<0.000000e+00> : vector<4x8x8xf32>
    %52 = tpu.matmul %51, %39, %cst_8 {dimension_numbers = #tpu.dot_dimension_numbers<[2], [1], [1], [2], [0, 0, 0, 1, 1, 2], [0], [0]>} : vector<4x8x8xbf16>, vector<4x8x8xbf16>, vector<4x8x8xf32> -> vector<4x8x8xf32>
    "tpu.trace_stop"() : () -> ()
    %53 = vector.extract_strided_slice %52 {offsets = [0, 0, 0], sizes = [1, 8, 8], strides = [1, 1, 1]} : vector<4x8x8xf32> to vector<1x8x8xf32>
    %54 = vector.shape_cast %53 : vector<1x8x8xf32> to vector<8x8xf32>
    %55 = vector.extract_strided_slice %52 {offsets = [1, 0, 0], sizes = [1, 8, 8], strides = [1, 1, 1]} : vector<4x8x8xf32> to vector<1x8x8xf32>
    %56 = vector.shape_cast %55 : vector<1x8x8xf32> to vector<8x8xf32>
    %57 = vector.extract_strided_slice %52 {offsets = [2, 0, 0], sizes = [1, 8, 8], strides = [1, 1, 1]} : vector<4x8x8xf32> to vector<1x8x8xf32>
    %58 = vector.shape_cast %57 : vector<1x8x8xf32> to vector<8x8xf32>
    %59 = vector.extract_strided_slice %52 {offsets = [3, 0, 0], sizes = [1, 8, 8], strides = [1, 1, 1]} : vector<4x8x8xf32> to vector<1x8x8xf32>
    %60 = vector.shape_cast %59 : vector<1x8x8xf32> to vector<8x8xf32>
    %61 = tpu.concatenate %54, %56, %58, %60 in 1 : vector<8x8xf32>, vector<8x8xf32>, vector<8x8xf32>, vector<8x8xf32> -> vector<8x32xf32>
    %62 = arith.truncf %61 : vector<8x32xf32> to vector<8x32xbf16>
    %c0_9 = arith.constant 0 : index
    %c0_10 = arith.constant 0 : index
    %63 = vector.load %arg3[%c0_9, %c0_10] : memref<32x32xbf16, #tpu.memory_space<vmem>>, vector<32x32xbf16>
    %cst_11 = arith.constant dense<0.000000e+00> : vector<8x32xf32>
    %64 = tpu.matmul %62, %63, %cst_11 {dimension_numbers = #tpu.dot_dimension_numbers<[1], [0], [0], [1], [0, 0, 1, 1], [], []>} : vector<8x32xbf16>, vector<32x32xbf16>, vector<8x32xf32> -> vector<8x32xf32>
    %65 = arith.addf %64, %1 : vector<8x32xf32>
    %c0_12 = arith.constant 0 : index
    %c0_13 = arith.constant 0 : index
    %66 = vector.load %arg4[%c0_12, %c0_13] : memref<1x32xf32, #tpu.memory_space<vmem>>, vector<1x32xf32>
    %c0_14 = arith.constant 0 : index
    %c0_15 = arith.constant 0 : index
    %67 = vector.load %arg5[%c0_14, %c0_15] : memref<1x32xf32, #tpu.memory_space<vmem>>, vector<1x32xf32>
    %cst_16 = arith.constant dense<0.000000e+00> : vector<8xf32>
    %68 = vector.multi_reduction <add>, %65, %cst_16 [1] : vector<8x32xf32> to vector<8xf32>
    %69 = vector.shape_cast %68 : vector<8xf32> to vector<8x1xf32>
    %cst_17 = arith.constant 3.200000e+01 : f32
    %70 = vector.broadcast %cst_17 : f32 to vector<8x1xf32>
    %71 = arith.divf %69, %70 : vector<8x1xf32>
    %72 = vector.broadcast %71 : vector<8x1xf32> to vector<8x32xf32>
    %73 = arith.subf %65, %72 : vector<8x32xf32>
    %74 = arith.mulf %73, %73 : vector<8x32xf32>
    %cst_18 = arith.constant dense<0.000000e+00> : vector<8xf32>
    %75 = vector.multi_reduction <add>, %74, %cst_18 [1] : vector<8x32xf32> to vector<8xf32>
    %76 = vector.shape_cast %75 : vector<8xf32> to vector<8x1xf32>
    %cst_19 = arith.constant 3.200000e+01 : f32
    %77 = vector.broadcast %cst_19 : f32 to vector<8x1xf32>
    %78 = arith.divf %76, %77 : vector<8x1xf32>
    %79 = vector.broadcast %71 : vector<8x1xf32> to vector<8x32xf32>
    %80 = arith.subf %65, %79 : vector<8x32xf32>
    %cst_20 = arith.constant 9.99999997E-7 : f32
    %81 = vector.broadcast %cst_20 : f32 to vector<8x1xf32>
    %82 = arith.addf %78, %81 : vector<8x1xf32>
    %83 = math.rsqrt %82 : vector<8x1xf32>
    %84 = vector.broadcast %83 : vector<8x1xf32> to vector<8x32xf32>
    %85 = arith.mulf %80, %84 : vector<8x32xf32>
    %86 = vector.broadcast %66 : vector<1x32xf32> to vector<8x32xf32>
    %87 = arith.mulf %85, %86 : vector<8x32xf32>
    %88 = vector.broadcast %67 : vector<1x32xf32> to vector<8x32xf32>
    %89 = arith.addf %87, %88 : vector<8x32xf32>
    %90 = arith.truncf %89 : vector<8x32xf32> to vector<8x32xbf16>
    %c0_21 = arith.constant 0 : index
    %c0_22 = arith.constant 0 : index
    %91 = vector.load %arg6[%c0_21, %c0_22] : memref<32x64xbf16, #tpu.memory_space<vmem>>, vector<32x64xbf16>
    %cst_23 = arith.constant dense<0.000000e+00> : vector<8x64xf32>
    %92 = tpu.matmul %90, %91, %cst_23 {dimension_numbers = #tpu.dot_dimension_numbers<[1], [0], [0], [1], [0, 0, 1, 1], [], []>} : vector<8x32xbf16>, vector<32x64xbf16>, vector<8x64xf32> -> vector<8x64xf32>
    %c0_24 = arith.constant 0 : index
    %c0_25 = arith.constant 0 : index
    %93 = vector.load %arg7[%c0_24, %c0_25] : memref<1x64xf32, #tpu.memory_space<vmem>>, vector<1x64xf32>
    %94 = vector.broadcast %93 : vector<1x64xf32> to vector<8x64xf32>
    %95 = arith.addf %92, %94 : vector<8x64xf32>
    %cst_26 = arith.constant 0.000000e+00 : f32
    %96 = vector.broadcast %cst_26 : f32 to vector<8x64xf32>
    %97 = arith.maximumf %95, %96 : vector<8x64xf32>
    %98 = arith.truncf %97 : vector<8x64xf32> to vector<8x64xbf16>
    %c0_27 = arith.constant 0 : index
    %c0_28 = arith.constant 0 : index
    %99 = vector.load %arg8[%c0_27, %c0_28] : memref<64x32xbf16, #tpu.memory_space<vmem>>, vector<64x32xbf16>
    %cst_29 = arith.constant dense<0.000000e+00> : vector<8x32xf32>
    %100 = tpu.matmul %98, %99, %cst_29 {dimension_numbers = #tpu.dot_dimension_numbers<[1], [0], [0], [1], [0, 0, 1, 1], [], []>} : vector<8x64xbf16>, vector<64x32xbf16>, vector<8x32xf32> -> vector<8x32xf32>
    %c0_30 = arith.constant 0 : index
    %c0_31 = arith.constant 0 : index
    %101 = vector.load %arg9[%c0_30, %c0_31] : memref<1x32xf32, #tpu.memory_space<vmem>>, vector<1x32xf32>
    %102 = vector.broadcast %101 : vector<1x32xf32> to vector<8x32xf32>
    %103 = arith.addf %100, %102 : vector<8x32xf32>
    %104 = arith.addf %103, %89 : vector<8x32xf32>
    %c0_32 = arith.constant 0 : index
    %c0_33 = arith.constant 0 : index
    %105 = vector.load %arg10[%c0_32, %c0_33] : memref<1x32xf32, #tpu.memory_space<vmem>>, vector<1x32xf32>
    %c0_34 = arith.constant 0 : index
    %c0_35 = arith.constant 0 : index
    %106 = vector.load %arg11[%c0_34, %c0_35] : memref<1x32xf32, #tpu.memory_space<vmem>>, vector<1x32xf32>
    %cst_36 = arith.constant dense<0.000000e+00> : vector<8xf32>
    %107 = vector.multi_reduction <add>, %104, %cst_36 [1] : vector<8x32xf32> to vector<8xf32>
    %108 = vector.shape_cast %107 : vector<8xf32> to vector<8x1xf32>
    %cst_37 = arith.constant 3.200000e+01 : f32
    %109 = vector.broadcast %cst_37 : f32 to vector<8x1xf32>
    %110 = arith.divf %108, %109 : vector<8x1xf32>
    %111 = vector.broadcast %110 : vector<8x1xf32> to vector<8x32xf32>
    %112 = arith.subf %104, %111 : vector<8x32xf32>
    %113 = arith.mulf %112, %112 : vector<8x32xf32>
    %cst_38 = arith.constant dense<0.000000e+00> : vector<8xf32>
    %114 = vector.multi_reduction <add>, %113, %cst_38 [1] : vector<8x32xf32> to vector<8xf32>
    %115 = vector.shape_cast %114 : vector<8xf32> to vector<8x1xf32>
    %cst_39 = arith.constant 3.200000e+01 : f32
    %116 = vector.broadcast %cst_39 : f32 to vector<8x1xf32>
    %117 = arith.divf %115, %116 : vector<8x1xf32>
    %118 = vector.broadcast %110 : vector<8x1xf32> to vector<8x32xf32>
    %119 = arith.subf %104, %118 : vector<8x32xf32>
    %cst_40 = arith.constant 9.99999997E-7 : f32
    %120 = vector.broadcast %cst_40 : f32 to vector<8x1xf32>
    %121 = arith.addf %117, %120 : vector<8x1xf32>
    %122 = math.rsqrt %121 : vector<8x1xf32>
    %123 = vector.broadcast %122 : vector<8x1xf32> to vector<8x32xf32>
    %124 = arith.mulf %119, %123 : vector<8x32xf32>
    %125 = vector.broadcast %105 : vector<1x32xf32> to vector<8x32xf32>
    %126 = arith.mulf %124, %125 : vector<8x32xf32>
    %127 = vector.broadcast %106 : vector<1x32xf32> to vector<8x32xf32>
    %128 = arith.addf %126, %127 : vector<8x32xf32>
    %c0_41 = arith.constant 0 : index
    %c0_42 = arith.constant 0 : index
    %c0_43 = arith.constant 0 : index
    %129 = vector.load %arg12[%c0_41, %c0_42, %c0_43] : memref<1x8x32xf32, #tpu.memory_space<vmem>>, vector<1x8x32xf32>
    %130 = vector.shape_cast %129 : vector<1x8x32xf32> to vector<8x32xf32>
    %131 = vector.shape_cast %128 : vector<8x32xf32> to vector<1x8x32xf32>
    tpu.vector_store %arg12[%c0_41, %c0_42, %c0_43], %131 {strides = array<i32>} : memref<1x8x32xf32, #tpu.memory_space<vmem>>, vector<1x8x32xf32>,
    return
  }
  func.func @transform_0(%arg0: i32) -> (i32, i32, i32) {
    %c0_i32 = arith.constant 0 : i32
    %c0_i32_0 = arith.constant 0 : i32
    %c0_i32_1 = arith.constant 0 : i32
    return %arg0, %c0_i32, %c0_i32_0 : i32, i32, i32
  }
  func.func @transform_1(%arg0: i32) -> (i32, i32) {
    %c0_i32 = arith.constant 0 : i32
    %c0_i32_0 = arith.constant 0 : i32
    %c0_i32_1 = arith.constant 0 : i32
    return %c0_i32, %c0_i32_0 : i32, i32
  }
  func.func @transform_2(%arg0: i32) -> (i32, i32) {
    %c0_i32 = arith.constant 0 : i32
    %c0_i32_0 = arith.constant 0 : i32
    %c0_i32_1 = arith.constant 0 : i32
    return %c0_i32, %c0_i32_0 : i32, i32
  }
  func.func @transform_3(%arg0: i32) -> (i32, i32) {
    %c0_i32 = arith.constant 0 : i32
    %c0_i32_0 = arith.constant 0 : i32
    %c0_i32_1 = arith.constant 0 : i32
    return %c0_i32, %c0_i32_0 : i32, i32
  }
  func.func @transform_4(%arg0: i32) -> (i32, i32) {
    %c0_i32 = arith.constant 0 : i32
    %c0_i32_0 = arith.constant 0 : i32
    %c0_i32_1 = arith.constant 0 : i32
    return %c0_i32, %c0_i32_0 : i32, i32
  }
  func.func @transform_5(%arg0: i32) -> (i32, i32) {
    %c0_i32 = arith.constant 0 : i32
    %c0_i32_0 = arith.constant 0 : i32
    %c0_i32_1 = arith.constant 0 : i32
    return %c0_i32, %c0_i32_0 : i32, i32
  }
  func.func @transform_6(%arg0: i32) -> (i32, i32) {
    %c0_i32 = arith.constant 0 : i32
    %c0_i32_0 = arith.constant 0 : i32
    %c0_i32_1 = arith.constant 0 : i32
    return %c0_i32, %c0_i32_0 : i32, i32
  }
  func.func @transform_7(%arg0: i32) -> (i32, i32) {
    %c0_i32 = arith.constant 0 : i32
    %c0_i32_0 = arith.constant 0 : i32
    %c0_i32_1 = arith.constant 0 : i32
    return %c0_i32, %c0_i32_0 : i32, i32
  }
  func.func @transform_8(%arg0: i32) -> (i32, i32) {
    %c0_i32 = arith.constant 0 : i32
    %c0_i32_0 = arith.constant 0 : i32
    %c0_i32_1 = arith.constant 0 : i32
    return %c0_i32, %c0_i32_0 : i32, i32
  }
  func.func @transform_9(%arg0: i32) -> (i32, i32) {
    %c0_i32 = arith.constant 0 : i32
    %c0_i32_0 = arith.constant 0 : i32
    %c0_i32_1 = arith.constant 0 : i32
    return %c0_i32, %c0_i32_0 : i32, i32
  }
  func.func @transform_10(%arg0: i32) -> (i32, i32) {
    %c0_i32 = arith.constant 0 : i32
    %c0_i32_0 = arith.constant 0 : i32
    %c0_i32_1 = arith.constant 0 : i32
    return %c0_i32, %c0_i32_0 : i32, i32
  }
  func.func @transform_11(%arg0: i32) -> (i32, i32, i32) {
    %c0_i32 = arith.constant 0 : i32
    %c0_i32_0 = arith.constant 0 : i32
    %c0_i32_1 = arith.constant 0 : i32
    return %arg0, %c0_i32, %c0_i32_0 : i32, i32, i32
  }
}

</mosaic_0001>

<bundles_post_ra>
// kernel: tpu_custom_call.1
= control target key start
LH: loop header
LB: loop body
LE: loop exit
PB: predicated region body
PF: predicated region fallthrough
CT: control target
= control target key end

     0   :  { %s2896_s0 = inlined_call_operand.hbm [shape: f32[2,8,32], index: 0, kind: input, shape index: {}]   ;;  %s2897_s1 = inlined_call_operand.hbm [shape: bf16[32,96], index: 1, kind: input, shape index: {}]   ;;  %s2898_s2 = inlined_call_operand.hbm [shape: bf16[32,32], index: 2, kind: input, shape index: {}]   ;;  %s2899_s3 = inlined_call_operand.hbm [shape: f32[1,32], index: 3, kind: input, shape index: {}]   ;;  %s2900_s4 = inlined_call_operand.hbm [shape: f32[1,32], index: 4, kind: input, shape index: {}]   ;;  %s2901_s5 = inlined_call_operand.hbm [shape: bf16[32,64], index: 5, kind: input, shape index: {}]   ;;  %s2902_s6 = inlined_call_operand.hbm [shape: f32[1,64], index: 6, kind: input, shape index: {}]   ;;  %s2903_s7 = inlined_call_operand.hbm [shape: bf16[64,32], index: 7, kind: input, shape index: {}]   ;;  %s2904_s8 = inlined_call_operand.hbm [shape: f32[1,32], index: 8, kind: input, shape index: {}]   ;;  %s2905_s9 = inlined_call_operand.hbm [shape: f32[1,32], index: 9, kind: input, shape index: {}]   ;;  %s2906_s10 = inlined_call_operand.hbm [shape: f32[1,32], index: 10, kind: input, shape index: {}]   ;;  %s2907_s11 = inlined_call_operand.hbm [shape: f32[2,8,32], index: 11, kind: output, shape index: {}]  }
   0x1   :  { %2914 = sst [smem:[#allocation29_spill]] %s2896_s0 }
   0x2   :  { %2915 = sst [smem:[#allocation30_spill]] %s2897_s1 }
   0x3   :  { %2916 = sst [smem:[#allocation31_spill]] %s2898_s2 }
   0x4   :  { %2917 = sst [smem:[#allocation32_spill]] %s2907_s11 }
   0x5   :  { %16 = vsyncpa [#allocation3], 0 }
   0x6   :  { %18 = vsyncpa [#allocation3 + $0x1], 0 }
   0x7   :  { %19 = vsyncpa [#allocation6], 0 }
   0x8   :  { %20 = vsyncpa [#allocation9], 0 }
   0x9   :  { %21 = vsyncpa [#allocation12], 0 }
   0xa   :  { %22 = vsyncpa [#allocation15], 0 }
   0xb   :  { %23 = vsyncpa [#allocation18], 0 }
   0xc   :  { %24 = vsyncpa [#allocation4], 0 }
   0xd   :  { %26 = vsyncpa [#allocation4 + $0x1], 0  ;;  %s2379_s17 = smov 0   ;;  %s2381_s18 = smov 0  }
   0xe   :  { %s2383_s19 = smov 0   ;;  %s2385_s20 = smov 0  }
   0xf LB: > { %s2295_s21 = smov [#allocation5]   ;;  %s2400_s23 = sadd.s32 4294967295, %s2293_s20   ;;  %s2293_s20 = sphi %s2385_s20, %s2950_s20   ;;  %s2289_s19 = sphi %s2383_s19, %s2949_s19   ;;  %s2285_s18 = sphi %s2381_s18, %s2948_s18   ;;  %s2281_s17 = sphi %s2379_s17, %s2947_s17  }
  0x10   : > { %s311_s22 = sshll.u32 %s2295_s21, 4  ;;  %p1535_p0 = scmp.ge.s32.totalorder %s2293_s20, 1  ;;  %s2405_s22 = int_to_ptr.vmem [resolvable:$true] %s311_s22 }
  0x11   : > { %p2911_p1 = scmp.eq.s32.totalorder %s2400_s23, 0  ;;  %p299_p2 = scmp.lt.s32.totalorder %s2293_s20, 3 }
  0x12   : > { %s2296_s25 = smov [#allocation8]   ;;  %s2297_s28 = smov [#allocation11]  }
  0x13   : > { %p2407_p3 = pnand %p1535_p0, %p299_p2  ;;  %s338_s26 = sshll.u32 %s2296_s25, 4  ;;  %s2420_s26 = int_to_ptr.vmem [resolvable:$true] %s338_s26 }
  0x14   : > { %s359_s29 = sshll.u32 %s2297_s28, 4  ;;  %s2921_s1 = sld [smem:[#allocation30_spill]]  ;;  %s2422_s29 = int_to_ptr.vmem [resolvable:$true] %s359_s29 }
  0x15   : > { %s2918_s24 = scalar_select %p2407_p3, 1, 0 }
  0x16   : > { %p1752_p5 = pneg %p2407_p3 }
  0x17   : > { %2919 = sst [smem:[#allocation28_spill]] %s2918_s24 }
  0x18   : > { %p2416_p6 = pnand %p1752_p5, %p2911_p1 }
  0x1a   : > { %s1897_s13 = scalar_lea.hbm %s2921_s1, 256  ;;  %p2432_p8 = pneg %p2416_p6 }
  0x1b   : > { %p1898_p7 = scmp.ne.s32.totalorder %s2921_s1, %s1897_s13  ;;  %p1904_p11 = scmp.lt.u32.totalorder %s1897_s13, %s2921_s1 }
  0x1d   : > { %p1900_p9 = pnand %p2432_p8, %p1898_p7 }
  0x1f   : > { %p1901_p10 = pneg %p1900_p9 }
  0x21   : > { %p1906_p12 = pnand %p1904_p11, %p1901_p10 }
  0x23   : > { %1909 = shalt.err (!%p1906_p12)
}
  0x24   : > { %s1910_s28 = scalar_lea.vmem %s2405_s22, 256  ;;  %p1918_p5 = scmp.lt.s32.totalorder %s2405_s22, %s2405_s22 }
  0x25   : > { %p1911_p13 = scmp.ne.s32.totalorder %s2405_s22, %s1910_s28  ;;  %p1919_p4 = scmp.lt.s32.totalorder %s1910_s28, %s1910_s28 }
  0x27   : > { %p1913_p0 = pnand %p1911_p13, %p2432_p8  ;;  %p1920_p7 = por %p1919_p4, %p1918_p5 }
  0x29   : > { %p1914_p2 = pneg %p1913_p0 }
  0x2b   : > { %p1921_p9 = pnand %p1920_p7, %p1914_p2 }
  0x2d   : > { %1924 = shalt.err (!%p1921_p9)
}
  0x2e   : > { %s2298_s30 = smov 64   ;;  %s2299_s12 = smov 4  }
  0x2f   : > { %1755 = dma.hbm_to_vmem [thread:$0]  (!%p2416_p6), %s2921_s1, 256, %s2405_s22, [#allocation6], %s2298_s30, %s2298_s30, %s2299_s12  }
  0x30   : > { %s1925_s25 = scalar_lea.hbm %s2899_s3, 16 }
  0x31   : > { %p1926_p4 = scmp.ne.s32.totalorder %s2899_s3, %s1925_s25  ;;  %p1932_p12 = scmp.lt.u32.totalorder %s1925_s25, %s2899_s3 }
  0x33   : > { %p1928_p10 = pnand %p1926_p4, %p2432_p8 }
  0x35   : > { %p1929_p11 = pneg %p1928_p10 }
  0x37   : > { %p1934_p13 = pnand %p1932_p12, %p1929_p11 }
  0x39   : > { %1937 = shalt.err (!%p1934_p13)
}
  0x3a   : > { %s1938_s22 = scalar_lea.vmem %s2420_s26, 16  ;;  %s1945_s11 = scalar_lea.vmem %s2420_s26, 32 }
  0x3b   : > { %p1939_p0 = scmp.ne.s32.totalorder %s2420_s26, %s1938_s22  ;;  %p1946_p7 = scmp.lt.s32.totalorder %s2420_s26, %s2420_s26 }
  0x3c   : > { %p1947_p9 = scmp.lt.s32.totalorder %s1945_s11, %s1938_s22 }
  0x3d   : > { %p1941_p2 = pnand %p1939_p0, %p2432_p8 }
  0x3e   : > { %p1948_p4 = por %p1947_p9, %p1946_p7 }
  0x3f   : > { %p1942_p5 = pneg %p1941_p2 }
  0x41   : > { %p1949_p10 = pnand %p1948_p4, %p1942_p5 }
  0x43   : > { %1952 = shalt.err (!%p1949_p10)
}
  0x44   : > { %1761 = dma.hbm_to_vmem [thread:$0]  (!%p2416_p6), %s2899_s3, 16, %s2420_s26, [#allocation9]  }
  0x45   : > { %s1953_s15 = scalar_lea.hbm %s2901_s5, 256 }
  0x46   : > { %p1954_p11 = scmp.ne.s32.totalorder %s2901_s5, %s1953_s15  ;;  %p1960_p0 = scmp.lt.u32.totalorder %s1953_s15, %s2901_s5 }
  0x48   : > { %p1956_p12 = pnand %p1954_p11, %p2432_p8 }
  0x4a   : > { %p1957_p13 = pneg %p1956_p12 }
  0x4c   : > { %p1962_p2 = pnand %p1960_p0, %p1957_p13 }
  0x4e   : > { %1965 = shalt.err (!%p1962_p2)
}
  0x4f   : > { %s1966_s26 = scalar_lea.vmem %s2422_s29, 256  ;;  %p1974_p4 = scmp.lt.s32.totalorder %s2422_s29, %s2422_s29 }
  0x50   : > { %p1967_p5 = scmp.ne.s32.totalorder %s2422_s29, %s1966_s26  ;;  %p1975_p10 = scmp.lt.s32.totalorder %s1966_s26, %s1966_s26 }
  0x52   : > { %p1969_p7 = pnand %p1967_p5, %p2432_p8  ;;  %p1976_p11 = por %p1975_p10, %p1974_p4 }
  0x54   : > { %p1970_p9 = pneg %p1969_p7 }
  0x56   : > { %p1977_p12 = pnand %p1976_p11, %p1970_p9 }
  0x58   : > { %1980 = shalt.err (!%p1977_p12)
}
  0x59   : > { %1767 = dma.hbm_to_vmem [thread:$0]  (!%p2416_p6), %s2901_s5, 256, %s2422_s29, [#allocation12], %s2298_s30, %s2298_s30, %s2299_s12  }
  0x5a   : > { %s2300_s24 = smov [#allocation14]   ;;  %s2301_s14 = smov [#allocation17]  }
  0x5b   : > { %s383_s13 = sshll.u32 %s2300_s24, 4  ;;  %s408_s15 = sshll.u32 %s2301_s14, 4  ;;  %s384_s13 = int_to_ptr.vmem [resolvable:$true] %s383_s13  ;;  %s409_s15 = int_to_ptr.vmem [resolvable:$true] %s408_s15 }
  0x5c   : > { %s1981_s28 = scalar_lea.hbm %s2903_s7, 512 }
  0x5d   : > { %p1982_p13 = scmp.ne.s32.totalorder %s2903_s7, %s1981_s28  ;;  %p1988_p5 = scmp.lt.u32.totalorder %s1981_s28, %s2903_s7 }
  0x5f   : > { %p1984_p0 = pnand %p1982_p13, %p2432_p8 }
  0x61   : > { %p1985_p2 = pneg %p1984_p0 }
  0x63   : > { %p1990_p7 = pnand %p1988_p5, %p1985_p2 }
  0x65   : > { %1993 = shalt.err (!%p1990_p7)
}
  0x66   : > { %s1994_s29 = scalar_lea.vmem %s384_s13, 512  ;;  %p2002_p11 = scmp.lt.s32.totalorder %s384_s13, %s384_s13 }
  0x67   : > { %p1995_p9 = scmp.ne.s32.totalorder %s384_s13, %s1994_s29  ;;  %p2003_p12 = scmp.lt.s32.totalorder %s1994_s29, %s1994_s29 }
  0x69   : > { %p1997_p4 = pnand %p1995_p9, %p2432_p8  ;;  %p2004_p1 = por %p2003_p12, %p2002_p11 }
  0x6b   : > { %p1998_p10 = pneg %p1997_p4 }
  0x6d   : > { %p2005_p3 = pnand %p2004_p1, %p1998_p10 }
  0x6f   : > { %2008 = shalt.err (!%p2005_p3)
}
  0x70   : > { %1773 = dma.hbm_to_vmem [thread:$0]  (!%p2416_p6), %s2903_s7, 512, %s384_s13, [#allocation15], %s2298_s30, %s2298_s30, %s2299_s12  }
  0x71   : > { %s2009_s21 = scalar_lea.hbm %s2905_s9, 16 }
  0x72   : > { %p2010_p1 = scmp.ne.s32.totalorder %s2905_s9, %s2009_s21  ;;  %p2016_p0 = scmp.lt.u32.totalorder %s2009_s21, %s2905_s9 }
  0x74   : > { %p2012_p3 = pnand %p2010_p1, %p2432_p8 }
  0x76   : > { %p2013_p13 = pneg %p2012_p3 }
  0x78   : > { %p2018_p2 = pnand %p2016_p0, %p2013_p13 }
  0x7a   : > { %2021 = shalt.err (!%p2018_p2)
}
  0x7b   : > { %s2022_s11 = scalar_lea.vmem %s409_s15, 16  ;;  %s2029_s13 = scalar_lea.vmem %s409_s15, 32 }
  0x7c   : > { %p2023_p5 = scmp.ne.s32.totalorder %s409_s15, %s2022_s11  ;;  %p2030_p4 = scmp.lt.s32.totalorder %s409_s15, %s409_s15 }
  0x7d   : > { %p2031_p10 = scmp.lt.s32.totalorder %s2029_s13, %s2022_s11 }
  0x7e   : > { %p2025_p7 = pnand %p2023_p5, %p2432_p8 }
  0x7f   : > { %p2032_p11 = por %p2031_p10, %p2030_p4 }
  0x80   : > { %p2026_p9 = pneg %p2025_p7 }
  0x82   : > { %p2033_p12 = pnand %p2032_p11, %p2026_p9 }
  0x84   : > { %2036 = shalt.err (!%p2033_p12)
}
  0x85   : > { %1779 = dma.hbm_to_vmem [thread:$0]  (!%p2416_p6), %s2905_s9, 16, %s409_s15, [#allocation18]  }
  0x86   : > { %s2302_s0 = smov [#allocation7]   ;;  %s2303_s14 = smov [#allocation10]  }
  0x87   : > { %s324_s24 = sshll.u32 %s2302_s0, 4  ;;  %s349_s21 = sshll.u32 %s2303_s14, 4  ;;  %s325_s24 = int_to_ptr.vmem [resolvable:$true] %s324_s24  ;;  %s350_s21 = int_to_ptr.vmem [resolvable:$true] %s349_s21 }
  0x88   : > { %s2923_s2 = sld [smem:[#allocation31_spill]] }
  0x8e   : > { %s2037_s22 = scalar_lea.hbm %s2923_s2, 256 }
  0x8f   : > { %p2038_p1 = scmp.ne.s32.totalorder %s2923_s2, %s2037_s22  ;;  %p2044_p0 = scmp.lt.u32.totalorder %s2037_s22, %s2923_s2 }
  0x91   : > { %p2040_p3 = pnand %p2038_p1, %p2432_p8 }
  0x93   : > { %p2041_p13 = pneg %p2040_p3 }
  0x95   : > { %p2046_p2 = pnand %p2044_p0, %p2041_p13 }
  0x97   : > { %2049 = shalt.err (!%p2046_p2)
}
  0x98   : > { %s2050_s15 = scalar_lea.vmem %s325_s24, 256  ;;  %p2058_p4 = scmp.lt.s32.totalorder %s325_s24, %s325_s24 }
  0x99   : > { %p2051_p5 = scmp.ne.s32.totalorder %s325_s24, %s2050_s15  ;;  %p2059_p10 = scmp.lt.s32.totalorder %s2050_s15, %s2050_s15 }
  0x9b   : > { %p2053_p7 = pnand %p2051_p5, %p2432_p8  ;;  %p2060_p11 = por %p2059_p10, %p2058_p4 }
  0x9d   : > { %p2054_p9 = pneg %p2053_p7 }
  0x9f   : > { %p2061_p12 = pnand %p2060_p11, %p2054_p9 }
  0xa1   : > { %2064 = shalt.err (!%p2061_p12)
}
  0xa2   : > { %1758 = dma.hbm_to_vmem [thread:$0]  (!%p2416_p6), %s2923_s2, 256, %s325_s24, [#allocation6], %s2298_s30, %s2298_s30, %s2299_s12  }
  0xa3   : > { %s2065_s28 = scalar_lea.hbm %s2900_s4, 16 }
  0xa4   : > { %p2066_p1 = scmp.ne.s32.totalorder %s2900_s4, %s2065_s28  ;;  %p2072_p0 = scmp.lt.u32.totalorder %s2065_s28, %s2900_s4 }
  0xa6   : > { %p2068_p3 = pnand %p2066_p1, %p2432_p8 }
  0xa8   : > { %p2069_p13 = pneg %p2068_p3 }
  0xaa   : > { %p2074_p2 = pnand %p2072_p0, %p2069_p13 }
  0xac   : > { %2077 = shalt.err (!%p2074_p2)
}
  0xad   : > { %s2078_s29 = scalar_lea.vmem %s350_s21, 16  ;;  %s2085_s30 = scalar_lea.vmem %s350_s21, 32 }
  0xae   : > { %p2079_p5 = scmp.ne.s32.totalorder %s350_s21, %s2078_s29  ;;  %p2086_p4 = scmp.lt.s32.totalorder %s350_s21, %s350_s21 }
  0xaf   : > { %p2087_p10 = scmp.lt.s32.totalorder %s2085_s30, %s2078_s29 }
  0xb0   : > { %p2081_p7 = pnand %p2079_p5, %p2432_p8 }
  0xb1   : > { %p2088_p11 = por %p2087_p10, %p2086_p4 }
  0xb2   : > { %p2082_p9 = pneg %p2081_p7 }
  0xb4   : > { %p2089_p12 = pnand %p2088_p11, %p2082_p9 }
  0xb6   : > { %2092 = shalt.err (!%p2089_p12)
}
  0xb7   : > { %1764 = dma.hbm_to_vmem [thread:$0]  (!%p2416_p6), %s2900_s4, 16, %s350_s21, [#allocation9]  }
  0xb8   : > { %s2304_s15 = smov [#allocation13]   ;;  %s2305_s0 = smov [#allocation16]  }
  0xb9   : > { %s373_s1 = sshll.u32 %s2304_s15, 4  ;;  %s397_s14 = sshll.u32 %s2305_s0, 4  ;;  %s374_s1 = int_to_ptr.vmem [resolvable:$true] %s373_s1  ;;  %s398_s14 = int_to_ptr.vmem [resolvable:$true] %s397_s14 }
  0xba   : > { %s2093_s22 = scalar_lea.hbm %s2902_s6, 16 }
  0xbb   : > { %p2094_p1 = scmp.ne.s32.totalorder %s2902_s6, %s2093_s22  ;;  %p2100_p0 = scmp.lt.u32.totalorder %s2093_s22, %s2902_s6 }
  0xbd   : > { %p2096_p3 = pnand %p2094_p1, %p2432_p8 }
  0xbf   : > { %p2097_p13 = pneg %p2096_p3 }
  0xc1   : > { %p2102_p2 = pnand %p2100_p0, %p2097_p13 }
  0xc3   : > { %2105 = shalt.err (!%p2102_p2)
}
  0xc4   : > { %s2106_s21 = scalar_lea.vmem %s374_s1, 16  ;;  %s2113_s30 = scalar_lea.vmem %s374_s1, 32 }
  0xc5   : > { %p2107_p5 = scmp.ne.s32.totalorder %s374_s1, %s2106_s21  ;;  %p2114_p4 = scmp.lt.s32.totalorder %s374_s1, %s374_s1 }
  0xc6   : > { %p2115_p10 = scmp.lt.s32.totalorder %s2113_s30, %s2106_s21 }
  0xc7   : > { %p2109_p7 = pnand %p2107_p5, %p2432_p8 }
  0xc8   : > { %p2116_p11 = por %p2115_p10, %p2114_p4 }
  0xc9   : > { %p2110_p9 = pneg %p2109_p7 }
  0xcb   : > { %p2117_p12 = pnand %p2116_p11, %p2110_p9 }
  0xcd   : > { %2120 = shalt.err (!%p2117_p12)
}
  0xce   : > { %1770 = dma.hbm_to_vmem [thread:$0]  (!%p2416_p6), %s2902_s6, 16, %s374_s1, [#allocation12]  }
  0xcf   : > { %s2121_s25 = scalar_lea.hbm %s2904_s8, 16 }
  0xd0   : > { %p2122_p1 = scmp.ne.s32.totalorder %s2904_s8, %s2121_s25  ;;  %p2128_p0 = scmp.lt.u32.totalorder %s2121_s25, %s2904_s8 }
  0xd2   : > { %p2124_p3 = pnand %p2122_p1, %p2432_p8 }
  0xd4   : > { %p2125_p13 = pneg %p2124_p3 }
  0xd6   : > { %p2130_p2 = pnand %p2128_p0, %p2125_p13 }
  0xd8   : > { %2133 = shalt.err (!%p2130_p2)
}
  0xd9   : > { %s2134_s13 = scalar_lea.vmem %s398_s14, 16  ;;  %s2141_s1 = scalar_lea.vmem %s398_s14, 32 }
  0xda   : > { %p2135_p5 = scmp.ne.s32.totalorder %s398_s14, %s2134_s13  ;;  %p2142_p4 = scmp.lt.s32.totalorder %s398_s14, %s398_s14 }
  0xdb   : > { %p2143_p10 = scmp.lt.s32.totalorder %s2141_s1, %s2134_s13 }
  0xdc   : > { %p2137_p7 = pnand %p2135_p5, %p2432_p8 }
  0xdd   : > { %p2144_p11 = por %p2143_p10, %p2142_p4 }
  0xde   : > { %p2138_p9 = pneg %p2137_p7 }
  0xe0   : > { %p2145_p12 = pnand %p2144_p11, %p2138_p9 }
  0xe2   : > { %2148 = shalt.err (!%p2145_p12)
}
  0xe3   : > { %1776 = dma.hbm_to_vmem [thread:$0]  (!%p2416_p6), %s2904_s8, 16, %s398_s14, [#allocation15]  }
  0xe4   : > { %s2306_s30 = smov [#allocation19]   ;;  %s2149_s0 = scalar_lea.hbm %s2906_s10, 16 }
  0xe5   : > { %s419_s12 = sshll.u32 %s2306_s30, 4  ;;  %p2150_p1 = scmp.ne.s32.totalorder %s2906_s10, %s2149_s0  ;;  %s420_s12 = int_to_ptr.vmem [resolvable:$true] %s419_s12 }
  0xe6   : > { %p2156_p0 = scmp.lt.u32.totalorder %s2149_s0, %s2906_s10 }
  0xe7   : > { %p2152_p3 = pnand %p2150_p1, %p2432_p8 }
  0xe9   : > { %p2153_p13 = pneg %p2152_p3 }
  0xeb   : > { %p2158_p2 = pnand %p2156_p0, %p2153_p13 }
  0xed   : > { %2161 = shalt.err (!%p2158_p2)
}
  0xee   : > { %s2162_s14 = scalar_lea.vmem %s420_s12, 16  ;;  %s2169_s11 = scalar_lea.vmem %s420_s12, 32 }
  0xef   : > { %p2163_p5 = scmp.ne.s32.totalorder %s420_s12, %s2162_s14  ;;  %p2170_p4 = scmp.lt.s32.totalorder %s420_s12, %s420_s12 }
  0xf0   : > { %p2171_p10 = scmp.lt.s32.totalorder %s2169_s11, %s2162_s14 }
  0xf1   : > { %p2165_p7 = pnand %p2163_p5, %p2432_p8 }
  0xf2   : > { %p2172_p11 = por %p2171_p10, %p2170_p4 }
  0xf3   : > { %p2166_p9 = pneg %p2165_p7 }
  0xf5   : > { %p2173_p12 = pnand %p2172_p11, %p2166_p9 }
  0xf7   : > { %2176 = shalt.err (!%p2173_p12)
}
  0xf8   : > { %1782 = dma.hbm_to_vmem [thread:$0]  (!%p2416_p6), %s2906_s10, 16, %s420_s12, [#allocation18]  }
  0xf9   : > { %s1534_s16 = sadd.s32 4294967294, %s2293_s20   ;;  %s2640_s27 = sadd.s32 1, %s2293_s20  }
  0xfa   : > { %s36_s29 = ssub.s32 %s2293_s20, %s2640_s27  ;;  %s39_s21 = sadd.s32 1, %s2289_s19 }
  0xfb   : > { %p37_p8 = scmp.eq.s32.totalorder %s36_s29, 0  ;;  %p46_p1 = scmp.ne.s32.totalorder %s2289_s19, %s2285_s18 }
  0xfc   : > { %p47_p3 = scmp.eq.s32.totalorder %s2293_s20, 0  ;;  %p52_p13 = scmp.ne.s32.totalorder %s2285_s18, %s2281_s17 }
  0xfd   : > { %s2651_s30 = scalar_select %p37_p8, %s2289_s19, %s39_s21  }
  0xfe   : > { %p2653_p0 = por %p47_p3, %p46_p1  ;;  %p2925_p2 = scmp.eq.s32.totalorder %s2400_s23, 0 }
  0xff   : > { %p286_p5 = scmp.eq.s32.totalorder %s2400_s23, 1  ;;  %p292_p7 = scmp.eq.s32.totalorder %s1534_s16, 1 }
 0x100   : > { %p2659_p6 = por %p2925_p2, %p52_p13  ;;  %p1801_p9 = scmp.lt.s32.totalorder %s2293_s20, 2 }
 0x101   : > { %s430_s15 = sand.u32 1, %s2289_s19   ;;  %p2666_p4 = por %p286_p5, %p46_p1 }
 0x102   : > { %p2670_p10 = por %p292_p7, %p52_p13  ;;  %s1547_s28 = sshll.u32 %s430_s15, 3 }
 0x103   : > { %s2927_s0 = scalar_select %p2666_p4, 1, 0 }
 0x104   : > { %s2928_s25 = scalar_select %p2670_p10, 1, 0 }
 0x105   : > { %s1548_s22 = sshll.u32 %s2293_s20, 7  ;;  %s2929_s11 = sld [smem:[#allocation29_spill]] }
 0x106   : > { %s434_s1 = scalar_lea.vmem [#allocation2], %s1547_s28  ;;  %p2684_p11 = pnand %p1801_p9, %p2653_p0 }
 0x107   : > { %s441_s16 = sshll.u32 %s434_s1, 4  ;;  %s431_s21 = scalar_lea.sflag [#allocation3], %s430_s15  ;;  %s2680_s16 = int_to_ptr.vmem [resolvable:$true] %s441_s16 }
 0x108   : > { %p2179_p8 = pneg %p2684_p11 }
 0x10b   : > { %s2678_s13 = scalar_lea.hbm %s2929_s11, %s1548_s22  ;;  %s2182_s26 = scalar_lea.hbm %s2929_s11, 256 }
 0x10c   : > { %s2177_s2 = scalar_lea.hbm %s2678_s13, 128  ;;  %p2183_p13 = scmp.lt.u32.totalorder %s2678_s13, %s2929_s11 }
 0x10d   : > { %p2178_p12 = scmp.ne.s32.totalorder %s2678_s13, %s2177_s2  ;;  %p2184_p0 = scmp.lt.u32.totalorder %s2182_s26, %s2177_s2 }
 0x10e   : > { %p2186_p5 = scmp.lt.u32.totalorder %s2177_s2, %s2678_s13 }
 0x10f   : > { %p2180_p1 = pnand %p2179_p8, %p2178_p12  ;;  %p2185_p2 = por %p2184_p0, %p2183_p13 }
 0x111   : > { %p2181_p3 = pneg %p2180_p1  ;;  %p2187_p7 = por %p2186_p5, %p2185_p2 }
 0x113   : > { %p2188_p9 = pnand %p2187_p7, %p2181_p3 }
 0x115   : > { %2191 = shalt.err (!%p2188_p9)
}
 0x116   : > { %s2192_s15 = scalar_lea.vmem %s2680_s16, 128  ;;  %s2307_s1 = smov [#allocation2]  }
 0x117   : > { %p2193_p12 = scmp.ne.s32.totalorder %s2680_s16, %s2192_s15  ;;  %s2197_s28 = sshll.u32 %s2307_s1, 4  ;;  %s2198_s28 = int_to_ptr.vmem [resolvable:$false] %s2197_s28 }
 0x118   : > { %s2199_s22 = scalar_lea.vmem %s2198_s28, 256  ;;  %p2200_p4 = scmp.lt.s32.totalorder %s2680_s16, %s2198_s28 }
 0x119   : > { %p2195_p1 = pnand %p2193_p12, %p2179_p8  ;;  %p2201_p13 = scmp.lt.s32.totalorder %s2199_s22, %s2192_s15 }
 0x11b   : > { %p2196_p10 = pneg %p2195_p1  ;;  %p2202_p0 = por %p2201_p13, %p2200_p4 }
 0x11d   : > { %p2203_p2 = pnand %p2202_p0, %p2196_p10 }
 0x11f   : > { %2206 = shalt.err (!%p2203_p2)
}
 0x120   : > { %1786 = dma.hbm_to_vmem [thread:$0]  (!%p2684_p11), %s2678_s13, 128, %s2680_s16, %s431_s21  }
 0x121   : > { %s2931_s2 = sld [smem:[#allocation28_spill]] }
 0x127   : > { %p2932_p3 = scmp.ne.s32.totalorder %s2931_s2, 0 }
 0x128   : > { %s2716_s26 = sand.u32 (!%p2932_p3), 1, %s2285_s18  }
 0x129   : > { %450 = sbr.rel (%p2932_p3) target bundleno = 2939 (0xb7b), region = 64  ;;  %s1550_s24 = sshll.u32 (!%p2932_p3), %s2716_s26, 3 }
 0x12a   : > { %s453_s14 = scalar_lea.sflag (!%p2932_p3), [#allocation3], %s2716_s26  ;;  %s456_s15 = scalar_lea.vmem (!%p2932_p3), [#allocation2], %s1550_s24 }
 0x130   : > { %2252 = dma.done.wait (%p2659_p6), %s453_s14, 128  }
 0x131   : > { %2254 = vsyncadd (%p2659_p6), %s453_s14, 4294967168  ;;  %p2933_p4 = scmp.eq.s32.totalorder %s2400_s23, 0 }
 0x133   : > { %2256 = dma.done.wait (%p2933_p4), [#allocation6], 512   ;;  %p2934_p10 = pmov %p2933_p4 }
 0x134   : > { %p2935_p11 = pmov %p2933_p4 }
 0x135   : > { %2258 = vsyncadd (%p2934_p10), [#allocation6], 4294966784 }
 0x136   : > { %2260 = dma.done.wait (%p2935_p11), [#allocation9], 32   ;;  %p2936_p8 = pmov %p2933_p4 }
 0x137   : > { %p2937_p5 = pmov %p2933_p4 }
 0x138   : > { %2262 = vsyncadd (%p2936_p8), [#allocation9], 4294967264 }
 0x139   : > { %2264 = dma.done.wait (%p2937_p5), [#allocation12], 272   ;;  %p2938_p7 = pmov %p2933_p4 }
 0x13a   : > { %p2939_p6 = pmov %p2933_p4 }
 0x13b   : > { %2266 = vsyncadd (%p2938_p7), [#allocation12], 4294967024 }
 0x13c   : > { %2268 = dma.done.wait (%p2939_p6), [#allocation15], 528   ;;  %p2940_p9 = pmov %p2933_p4 }
 0x13d   : > { %p2941_p12 = pmov %p2933_p4 }
 0x13e   : > { %2270 = vsyncadd (%p2940_p9), [#allocation15], 4294966768 }
 0x13f   : > { %2272 = dma.done.wait (%p2941_p12), [#allocation18], 32   ;;  %p2942_p1 = pmov %p2933_p4 }
 0x140   : > { %v2308_v0 = vmov 0.0   ;;  %vm2309_vm0 = vmmov 0   ;;  %v1867_v1 = vld [vmem:[#allocation5] sm:$0xff]   ;;  %v1868_v2 = vld [vmem:[#allocation5 + $0x8] sm:$0xff]   ;;  %v2752_v3 = vld [vmem:[%s456_s15] sm:$0xff]  ;;  %vm554_vm1 = vcmask 261120  }
 0x141   : > { %2274 = vsyncadd (%p2942_p1), [#allocation18], 4294967264  ;;  %1624 = vmatprep.subr.bf16.mxu0 %v2308_v0  ;;  %1628 = vmatprep.mubr.msk.bf16.mxu0 %vm2309_vm0, %v2308_v0  ;;  %v537_v4 = vpack.c.bf16 %v2752_v3, %v2752_v3  ;;  %s2310_s12 = smov 104   ;;  %s2311_s13 = smov 120   ;;  %vm630_vm2 = vcmask 64512   ;;  %vm877_vm3 = vcmask 1043456  }
 0x142   : > { %1632 = vmatprep.subr.bf16.mxu1 %v2308_v0  ;;  %1634 = vmatprep.mubr.msk.bf16.mxu1 %vm2309_vm0, %v2308_v0  ;;  %s2312_s16 = smov 112   ;;  %s2313_s29 = smov 96   ;;  %vm1078_vm4 = vcmask 130048   ;;  %vm1080_vm5 = vcmask 195584   ;;  %vm1280_vm6 = vcmask 523264  }
 0x143   : > { %1625 = vmatpush3.bf16.msra.mxu0 %v1867_v1  ;;  %s2314_s21 = smov 64   ;;  %s2315_s1 = smov 8  }
 0x144   : > { %1626 = vmatprep.subr.bf16.mxu0 %v2308_v0  ;;  %s2316_s28 = smov 16   ;;  %s2317_s22 = smov 24  }
 0x145   : > { %s1591_s2 = sshll.u32 %s2400_s23, 7  ;;  %s534_s14 = scalar_lea.vmem [#allocation20], %s1550_s24 }
 0x146   : > { %s1369_s15 = sshll.u32 %s534_s14, 4  ;;  %p2944_p0 = scmp.ne.s32.totalorder %s2927_s0, 0  ;;  %s2853_s15 = int_to_ptr.vmem [resolvable:$true] %s1369_s15 }
 0x147   : > { %1627 = vmatpush3.bf16.msra.mxu0 %v1868_v2  ;;  %s2318_s23 = smov [#allocation20]  }
 0x148   : > { %1638 = vmatprep.subr.bf16.mxu0 %v2308_v0  ;;  %s2211_s24 = sshll.u32 %s2318_s23, 4  ;;  %s2212_s24 = int_to_ptr.vmem [resolvable:$false] %s2211_s24 }
 0x149   : > { %p2214_p4 = scmp.lt.s32.totalorder %s2853_s15, %s2212_s24 }
 0x14a   : > { %1629 = vmatmul.mubr.msk.bf16.vlgmr.msra.gmra.mrb[0].mxu0 %vm554_vm1, %v537_v4 }
 0x14b   : > { %1640 = vmatprep.mubr.msk.bf16.mxu0 %vm2309_vm0, %v2308_v0 }
 0x21d   : > { %v592_v5 = vpop.f32.mrb[0].mxu0 }
 0x21e   : > { %620 = vrot.lane.b32.xlu1 %v592_v5, %s2310_s12  ;;  %614 = vrot.lane.b32.xlu0 %v592_v5, %s2311_s13  ;;  %v1630_v6 = vpop.f32.mrb[1].mxu0  ;;  %v2761_v9 = vpack.c.bf16 %v592_v5, %v592_v5  ;;  %v598_v10 = vmul.f32 0.35355338, %v592_v5 }
 0x21f   : > { %v595_v7 = vpop.f32.mrb[2].mxu0 }
 0x220   : > { %v1631_v8 = vpop.f32.mrb[3].mxu0  ;;  %v609_v19 = vpack.c.bf16 %v598_v10, %v598_v10 }
 0x222   : > { %617 = vrot.lane.b32.xlu0 %v592_v5, %s2312_s16  ;;  %628 = vrot.lane.b32.xlu1 %v2761_v9, %s2313_s29 }
 0x226   : > { %600 = vrot.lane.b32.xlu1 %v598_v10, %s2311_s13 }
 0x290   : > { %v621_v11 = vpop.permute.xlu1 %620  ;;  %v615_v12 = vpop.permute.xlu0 %614 }
 0x291   : > { %v2764_v13 = vpack.c.bf16 %v621_v11, %v621_v11  ;;  %v2766_v14 = vpack.c.bf16 %v615_v12, %v615_v12 }
 0x293   : > { %678 = vrot.lane.b32.xlu0 %v2766_v14, %s2313_s29  ;;  %776 = vrot.lane.b32.xlu1 %v2764_v13, %s2313_s29 }
 0x294   : > { %v618_v15 = vpop.permute.xlu0 %617  ;;  %v629_v16 = vpop.permute.xlu1 %628 }
 0x295   : > { %v2770_v17 = vpack.c.bf16 %v618_v15, %v618_v15  ;;  %v635_v18 = vsel %vm630_vm2, %v629_v16, 0 }
 0x296   : > { %1633 = vmatpush3.bf16.xpose.msra.mxu1 %v635_v18 }
 0x297   : > { %727 = vrot.lane.b32.xlu0 %v2770_v17, %s2313_s29  ;;  %606 = vrot.lane.b32.xlu1 %v598_v10, %s2310_s12 }
 0x298   : > { %1644 = vmatprep.subr.bf16.mxu1 %v2308_v0  ;;  %v601_v22 = vpop.permute.xlu1 %600 }
 0x299   : > { %v610_v26 = vpack.c.bf16 %v601_v22, %v601_v22 }
 0x29b   : > { %603 = vrot.lane.b32.xlu0 %v598_v10, %s2312_s16  ;;  %s2943_s16 = sld [smem:[#allocation32_spill]] }
 0x29d   : > { %1635 = vmatmul.mubr.msk.bf16.vlgmr.msra.gmra.mrb[0].mxu1 %vm630_vm2, %v609_v19 }
 0x29e   : > { %1646 = vmatprep.mubr.msk.bf16.mxu1 %vm2309_vm0, %v2308_v0 }
 0x2a1   : > { %s2851_s29 = scalar_lea.hbm %s2943_s16, %s1591_s2 }
 0x305   : > { %v679_v20 = vpop.permute.xlu0 %678  ;;  %v777_v25 = vpop.permute.xlu1 %776 }
 0x306   : > { %v684_v21 = vsel %vm630_vm2, %v679_v20, 0  ;;  %v782_v28 = vsel %vm630_vm2, %v777_v25, 0 }
 0x307   : > { %1639 = vmatpush3.bf16.xpose.msra.mxu0 %v684_v21 }
 0x308   : > { %1650 = vmatprep.subr.bf16.mxu0 %v2308_v0 }
 0x309   : > { %v728_v23 = vpop.permute.xlu0 %727  ;;  %v607_v30 = vpop.permute.xlu1 %606 }
 0x30a   : > { %v733_v24 = vsel %vm630_vm2, %v728_v23, 0  ;;  %v612_v31 = vpack.c.bf16 %v607_v30, %v607_v30 }
 0x30b   : > { %1645 = vmatpush3.bf16.xpose.msra.mxu1 %v733_v24 }
 0x30c   : > { %1656 = vmatprep.subr.bf16.mxu1 %v2308_v0 }
 0x30d   : > { %v604_v27 = vpop.permute.xlu0 %603 }
 0x30e   : > { %1641 = vmatmul.mubr.msk.bf16.vlgmr.msra.gmra.mrb[4].mxu0 %vm630_vm2, %v610_v26  ;;  %v611_v29 = vpack.c.bf16 %v604_v27, %v604_v27 }
 0x30f   : > { %1651 = vmatpush3.bf16.xpose.msra.mxu0 %v782_v28  ;;  %1652 = vmatprep.mubr.msk.bf16.mxu0 %vm2309_vm0, %v2308_v0 }
 0x310   : > { %1662 = vmatprep.subr.bf16.mxu0 %v2308_v0 }
 0x312   : > { %1647 = vmatmul.mubr.msk.bf16.vlgmr.msra.gmra.mrb[4].mxu1 %vm630_vm2, %v611_v29 }
 0x313   : > { %1658 = vmatprep.mubr.msk.bf16.mxu1 %vm2309_vm0, %v2308_v0 }
 0x316   : > { %1653 = vmatmul.mubr.msk.bf16.vlgmr.msra.gmra.mrb[8].mxu0 %vm630_vm2, %v612_v31 }
 0x317   : > { %1664 = vmatprep.mubr.msk.bf16.mxu0 %vm2309_vm0, %v2308_v0 }
 0x370   : > { %v671_v32 = vpop.f32.mrb[0].mxu1 }
 0x371   : > { %v1636_v33 = vpop.f32.mrb[1].mxu1  ;;  %v824_v34 = vsel %vm630_vm2, %v671_v32, -inf }
 0x372   : > { %825 = vmax.xlane.f32.xlu0 %v824_v34  ;;  %v674_v35 = vpop.f32.mrb[2].mxu1 }
 0x373   : > { %v1637_v36 = vpop.f32.mrb[3].mxu1 }
 0x3e1   : > { %v720_v37 = vpop.f32.mrb[4].mxu0 }
 0x3e2   : > { %v1642_v38 = vpop.f32.mrb[5].mxu0  ;;  %v827_v39 = vsel %vm630_vm2, %v720_v37, -inf }
 0x3e3   : > { %828 = vmax.xlane.f32.xlu1 %v827_v39  ;;  %v723_v40 = vpop.f32.mrb[6].mxu0  ;;  %v1869_v38 = vld [vmem:[#allocation7] sm:$0xff]   ;;  %v1870_v39 = vld [vmem:[#allocation7 + $0x8] sm:$0xff]  }
 0x3e4   : > { %v1643_v41 = vpop.f32.mrb[7].mxu0 }
 0x3e5   : > { %v769_v42 = vpop.f32.mrb[4].mxu1 }
 0x3e6   : > { %v1648_v43 = vpop.f32.mrb[5].mxu1  ;;  %v830_v44 = vsel %vm630_vm2, %v769_v42, -inf }
 0x3e7   : > { %831 = vmax.xlane.f32.xlu0 %v830_v44  ;;  %v772_v45 = vpop.f32.mrb[6].mxu1 }
 0x3e8   : > { %v1649_v46 = vpop.f32.mrb[7].mxu1 }
 0x3e9   : > { %v818_v47 = vpop.f32.mrb[8].mxu0 }
 0x3ea   : > { %v1654_v48 = vpop.f32.mrb[9].mxu0  ;;  %v833_v49 = vsel %vm630_vm2, %v818_v47, -inf }
 0x3eb   : > { %834 = vmax.xlane.f32.xlu0 %v833_v49  ;;  %v821_v50 = vpop.f32.mrb[10].mxu0 }
 0x3ec   : > { %v1655_v51 = vpop.f32.mrb[11].mxu0 }
 0x3f4   : > { %872 = vrot.lane.b32.xlu1 %v2761_v9, %s2314_s21 }
 0x3ff   : > { %v826_v52 = vpop.xlane.xlu0 %825 }
 0x400   : > { %v836_v53 = vsub.f32 %v671_v32, %v826_v52 }
 0x402   : > { %v840_v54 = vmul.f32 1.442695, %v836_v53 }
 0x404   : > { %1877 = vpow2.f32 %v840_v54 }
 0x40e   : > { %v1878_v55 = vpop.eup %1877 }
 0x40f   : > { %v848_v56 = vsel %vm630_vm2, %v1878_v55, 0.0 }
 0x418   : > { %849 = vadd.xlane.f32.xlu1 %v848_v56 }
 0x470   : > { %v829_v57 = vpop.xlane.xlu1 %828 }
 0x471   : > { %v837_v58 = vsub.f32 %v720_v37, %v829_v57 }
 0x473   : > { %v842_v59 = vmul.f32 1.442695, %v837_v58 }
 0x474   : > { %v832_v60 = vpop.xlane.xlu0 %831  ;;  %v873_v61 = vpop.permute.xlu1 %872 }
 0x475   : > { %1879 = vpow2.f32 %v842_v59  ;;  %v838_v62 = vsub.f32 %v769_v42, %v832_v60  ;;  %v879_v63 = vsel %vm877_vm3, %v873_v61, 0 }
 0x476   : > { %1657 = vmatpush3.bf16.msra.mxu1 %v879_v63 }
 0x477   : > { %v844_v1 = vmul.f32 1.442695, %v838_v62  ;;  %1668 = vmatprep.subr.bf16.mxu1 %v2308_v0 }
 0x478   : > { %v835_v2 = vpop.xlane.xlu0 %834 }
 0x479   : > { %1881 = vpow2.f32 %v844_v1  ;;  %v839_v4 = vsub.f32 %v818_v47, %v835_v2 }
 0x47b   : > { %v846_v5 = vmul.f32 1.442695, %v839_v4 }
 0x47d   : > { %1883 = vpow2.f32 %v846_v5 }
 0x47f   : > { %v1880_v6 = vpop.eup %1879 }
 0x480   : > { %v851_v7 = vsel %vm630_vm2, %v1880_v6, 0.0 }
 0x481   : > { %852 = vadd.xlane.f32.xlu0 %v851_v7 }
 0x483   : > { %v1882_v8 = vpop.eup %1881 }
 0x484   : > { %v854_v9 = vsel %vm630_vm2, %v1882_v8, 0.0 }
 0x485   : > { %855 = vadd.xlane.f32.xlu1 %v854_v9  ;;  %v1872_v9 = vld [vmem:[#allocation11 + $0x8] sm:$0xff]  }
 0x487   : > { %v1884_v10 = vpop.eup %1883 }
 0x488   : > { %v857_v11 = vsel %vm630_vm2, %v1884_v10, 0.0 }
 0x489   : > { %858 = vadd.xlane.f32.xlu0 %v857_v11 }
 0x496   : > { %969 = vrot.lane.b32.xlu1 %v2770_v17, %s2314_s21 }
 0x49a   : > { %1017 = vrot.lane.b32.xlu1 %v2764_v13, %s2314_s21 }
 0x49f   : > { %921 = vrot.lane.b32.xlu0 %v2766_v14, %s2314_s21  ;;  %s1356_s21 = scalar_lea.sflag [#allocation4], %s2716_s26 }
 0x4a5   : > { %v850_v12 = vpop.xlane.xlu1 %849 }
 0x4a6   : > { %1885 = vrcp.f32 %v850_v12 }
 0x4b0   : > { %v1886_v15 = vpop.eup %1885 }
 0x4b1   : > { %v864_v16 = vmul.f32 %v1886_v15, %v1878_v55 }
 0x4b3   : > { %v868_v18 = vpack.c.bf16 %v864_v16, %v864_v16 }
 0x4b5   : > { %1659 = vmatmul.mubr.msk.bf16.vlgmr.msra.gmra.mrb[8].mxu1 %vm630_vm2, %v868_v18  ;;  %v1576_v18 = vld [vmem:[#allocation8] ss:$0 sm:$0xff] }
 0x4b6   : > { %1670 = vmatprep.mubr.msk.bf16.mxu1 %vm2309_vm0, %v2308_v0 }
 0x50e   : > { %v853_v19 = vpop.xlane.xlu0 %852 }
 0x50f   : > { %1887 = vrcp.f32 %v853_v19 }
 0x512   : > { %v856_v20 = vpop.xlane.xlu1 %855 }
 0x513   : > { %1889 = vrcp.f32 %v856_v20  ;;  %v1577_v20 = vld [vmem:[#allocation10] ss:$0 sm:$0xff] }
 0x516   : > { %v970_v17 = vpop.permute.xlu1 %969  ;;  %v859_v21 = vpop.xlane.xlu0 %858 }
 0x517   : > { %v975_v13 = vsel %vm877_vm3, %v970_v17, 0  ;;  %1891 = vrcp.f32 %v859_v21 }
 0x518   : > { %1669 = vmatpush3.bf16.msra.mxu1 %v975_v13 }
 0x519   : > { %v1888_v14 = vpop.eup %1887  ;;  %1680 = vmatprep.subr.bf16.mxu1 %v2308_v0 }
 0x51a   : > { %v865_v22 = vmul.f32 %v1888_v14, %v1880_v6  ;;  %v922_v23 = vpop.permute.xlu0 %921  ;;  %v1018_v25 = vpop.permute.xlu1 %1017  ;;  %v1875_v14 = vld [vmem:[#allocation14 + $0x10] sm:$0xff]  }
 0x51b   : > { %v927_v24 = vsel %vm877_vm3, %v922_v23, 0  ;;  %v1023_v29 = vsel %vm877_vm3, %v1018_v25, 0  ;;  %v1578_v23 = vld [vmem:[#allocation13] ss:$0 sm:$0xff] }
 0x51c   : > { %1663 = vmatpush3.bf16.msra.mxu0 %v927_v24  ;;  %v869_v26 = vpack.c.bf16 %v865_v22, %v865_v22  ;;  %v1876_v22 = vld [vmem:[#allocation14 + $0x18] sm:$0xff]  }
 0x51d   : > { %v1890_v27 = vpop.eup %1889  ;;  %1674 = vmatprep.subr.bf16.mxu0 %v2308_v0 }
 0x51e   : > { %v866_v28 = vmul.f32 %v1890_v27, %v1882_v8  ;;  %v1871_v8 = vld [vmem:[#allocation11] sm:$0xff]  }
 0x51f   : > { %1665 = vmatmul.mubr.msk.bf16.vlgmr.msra.gmra.mrb[12].mxu0 %vm630_vm2, %v869_v26 }
 0x520   : > { %1675 = vmatpush3.bf16.msra.mxu0 %v1023_v29  ;;  %v870_v30 = vpack.c.bf16 %v866_v28, %v866_v28  ;;  %1676 = vmatprep.mubr.msk.bf16.mxu0 %vm2309_vm0, %v2308_v0 }
 0x521   : > { %v1892_v31 = vpop.eup %1891  ;;  %1688 = vmatprep.subr.bf16.mxu0 %v2308_v0 }
 0x522   : > { %v867_v32 = vmul.f32 %v1892_v31, %v1884_v10  ;;  %1671 = vmatmul.mubr.msk.bf16.vlgmr.msra.gmra.mrb[12].mxu1 %vm630_vm2, %v870_v30  ;;  %v1874_v10 = vld [vmem:[#allocation14 + $0x8] sm:$0xff]   ;;  %v1582_v31 = vld [vmem:[#allocation16] ss:$0 sm:$0xff] }
 0x523   : > { %1684 = vmatprep.mubr.msk.bf16.mxu1 %vm2309_vm0, %v2308_v0  ;;  %1681 = vmatpush3.bf16.msra.mxu1 %v1869_v38 }
 0x524   : > { %v871_v33 = vpack.c.bf16 %v867_v32, %v867_v32  ;;  %1682 = vmatprep.subr.bf16.mxu1 %v2308_v0 }
 0x527   : > { %1677 = vmatmul.mubr.msk.bf16.vlgmr.msra.gmra.mrb[16].mxu0 %vm630_vm2, %v871_v33  ;;  %1683 = vmatpush3.bf16.msra.mxu1 %v1870_v39 }
 0x528   : > { %1692 = vmatprep.mubr.msk.bf16.mxu0 %vm2309_vm0, %v2308_v0  ;;  %1696 = vmatprep.subr.bf16.mxu1 %v2308_v0 }
 0x529   : > { %1689 = vmatpush3.bf16.msra.mxu0 %v1871_v8 }
 0x52a   : > { %1690 = vmatprep.subr.bf16.mxu0 %v2308_v0 }
 0x52d   : > { %1691 = vmatpush3.bf16.msra.mxu0 %v1872_v9 }
 0x588   : > { %v915_v34 = vpop.f32.mrb[8].mxu1 }
 0x589   : > { %v1660_v35 = vpop.f32.mrb[9].mxu1 }
 0x58a   : > { %v918_v36 = vpop.f32.mrb[10].mxu1 }
 0x58b   : > { %v1661_v37 = vpop.f32.mrb[11].mxu1 }
 0x5f2   : > { %v963_v40 = vpop.f32.mrb[12].mxu0 }
 0x5f3   : > { %1066 = vrot.lane.b32.xlu0 %v963_v40, %s2315_s1  ;;  %v1666_v41 = vpop.f32.mrb[13].mxu0  ;;  %s2207_s1 = scalar_lea.vmem %s2853_s15, 128 }
 0x5f4   : > { %v966_v42 = vpop.f32.mrb[14].mxu0  ;;  %p2208_p13 = scmp.ne.s32.totalorder %s2853_s15, %s2207_s1 }
 0x5f5   : > { %v1667_v43 = vpop.f32.mrb[15].mxu0  ;;  %v1011_v44 = vpop.f32.mrb[12].mxu1 }
 0x5f6   : > { %1070 = vrot.lane.b32.xlu1 %v1011_v44, %s2316_s28  ;;  %v1672_v45 = vpop.f32.mrb[13].mxu1  ;;  %p2209_p2 = pnand %p2208_p13, %p2944_p0  ;;  %s2213_s28 = scalar_lea.vmem %s2212_s24, 256 }
 0x5f7   : > { %v1014_v46 = vpop.f32.mrb[14].mxu1  ;;  %p2215_p10 = scmp.lt.s32.totalorder %s2213_s28, %s2207_s1 }
 0x5f8   : > { %v1673_v47 = vpop.f32.mrb[15].mxu1  ;;  %p2210_p3 = pneg %p2209_p2 }
 0x5f9   : > { %v1588_v47 = vld [vmem:[#allocation17] ss:$0 sm:$0xff]  ;;  %p2216_p11 = por %p2215_p10, %p2214_p4 }
 0x5fa   : > { %v1059_v48 = vpop.f32.mrb[16].mxu0 }
 0x5fb   : > { %1074 = vrot.lane.b32.xlu0 %v1059_v48, %s2317_s22  ;;  %v1678_v49 = vpop.f32.mrb[17].mxu0  ;;  %p2217_p8 = pnand %p2216_p11, %p2210_p3 }
 0x5fc   : > { %v1062_v50 = vpop.f32.mrb[18].mxu0  ;;  %v1589_v49 = vld [vmem:[#allocation19] ss:$0 sm:$0xff] }
 0x5fd   : > { %v1679_v51 = vpop.f32.mrb[19].mxu0 }
 0x665   : > { %v1067_v52 = vpop.permute.xlu0 %1066 }
 0x666   : > { %v1077_v54 = vsel %vm630_vm2, %v915_v34, %v1067_v52 }
 0x668   : > { %v1071_v53 = vpop.permute.xlu1 %1070 }
 0x669   : > { %v1079_v55 = vsel %vm1078_vm4, %v1077_v54, %v1071_v53 }
 0x66d   : > { %v1075_v56 = vpop.permute.xlu0 %1074 }
 0x66e   : > { %v1081_v57 = vsel %vm1080_vm5, %v1079_v55, %v1075_v56 }
 0x66f   : > { %v1082_v58 = vpack.c.bf16 %v1081_v57, %v1081_v57 }
 0x671   : > { %1685 = vmatmul.mubr.msk.bf16.vlgmr.msra.gmra.mrb[16].mxu1 %vm554_vm1, %v1082_v58 }
 0x672   : > { %1704 = vmatprep.mubr.msk.bf16.mxu1 %vm2309_vm0, %v2308_v0 }
 0x744   : > { %v1136_v59 = vpop.f32.mrb[16].mxu1 }
 0x745   : > { %v1137_v60 = vadd.f32 %v1136_v59, %v2752_v3  ;;  %v1686_v61 = vpop.f32.mrb[17].mxu1  ;;  %v1873_v3 = vld [vmem:[#allocation14] sm:$0xff]  }
 0x746   : > { %v1139_v62 = vpop.f32.mrb[18].mxu1  ;;  %1697 = vmatpush3.bf16.msra.mxu1 %v1873_v3 }
 0x747   : > { %v1687_v63 = vpop.f32.mrb[19].mxu1  ;;  %v1144_v1 = vsel %vm554_vm1, %v1137_v60, 0.0  ;;  %1698 = vmatprep.subr.bf16.mxu1 %v2308_v0 }
 0x748   : > { %1145 = vadd.xlane.f32.xlu1 %v1144_v1 }
 0x74a   : > { %1699 = vmatpush3.bf16.msra.mxu1 %v1874_v10 }
 0x74b   : > { %1700 = vmatprep.subr.bf16.mxu1 %v2308_v0 }
 0x74e   : > { %1701 = vmatpush3.bf16.msra.mxu1 %v1875_v14 }
 0x74f   : > { %1702 = vmatprep.subr.bf16.mxu1 %v2308_v0 }
 0x752   : > { %1703 = vmatpush3.bf16.msra.mxu1 %v1876_v22 }
 0x7d5   : > { %v1146_v2 = vpop.xlane.xlu1 %1145 }
 0x7d6   : > { %v1148_v4 = vmul.f32 0.03125, %v1146_v2 }
 0x7d8   : > { %v1149_v5 = vsub.f32 %v1137_v60, %v1148_v4 }
 0x7da   : > { %v1150_v6 = vmul.f32 %v1149_v5, %v1149_v5 }
 0x7dc   : > { %v1151_v7 = vsel %vm554_vm1, %v1150_v6, 0.0 }
 0x7dd   : > { %1152 = vadd.xlane.f32.xlu0 %v1151_v7 }
 0x86a   : > { %v1153_v11 = vpop.xlane.xlu0 %1152 }
 0x86b   : > { %v1154_v12 = vmul.f32 0.03125, %v1153_v11 }
 0x86d   : > { %v1155_v15 = vadd.f32 1e-06, %v1154_v12 }
 0x86f   : > { %1893 = vrsqrt.f32 %v1155_v15 }
 0x879   : > { %v1894_v16 = vpop.eup %1893 }
 0x87a   : > { %v1157_v19 = vmul.f32 %v1894_v16, %v1149_v5 }
 0x87c   : > { %v1164_v17 = vmul.f32 %v1576_v18, %v1157_v19 }
 0x87e   : > { %v1171_v21 = vadd.f32 %v1577_v20, %v1164_v17 }
 0x880   : > { %v1172_v13 = vpack.c.bf16 %v1171_v21, %v1171_v21 }
 0x882   : > { %1693 = vmatmul.mubr.msk.bf16.vlgmr.msra.gmra.mrb[20].mxu0 %vm554_vm1, %v1172_v13 }
 0x955   : > { %v1233_v24 = vpop.f32.mrb[20].mxu0 }
 0x956   : > { %v1234_v25 = vadd.f32 %v1578_v23, %v1233_v24  ;;  %v1694_v26 = vpop.f32.mrb[21].mxu0 }
 0x957   : > { %v1236_v27 = vpop.f32.mrb[22].mxu0 }
 0x958   : > { %v1239_v28 = vmax.f32 %v1234_v25, 0.0  ;;  %v1695_v29 = vpop.f32.mrb[23].mxu0 }
 0x95a   : > { %v1240_v30 = vpack.c.bf16 %v1239_v28, %v1239_v28 }
 0x95c   : > { %1705 = vmatmul.mubr.msk.bf16.vlgmr.msra.gmra.mrb[20].mxu1 %vm1280_vm6, %v1240_v30 }
 0xa2f   : > { %v1318_v32 = vpop.f32.mrb[20].mxu1 }
 0xa30   : > { %v1319_v33 = vadd.f32 %v1582_v31, %v1318_v32  ;;  %v1706_v34 = vpop.f32.mrb[21].mxu1 }
 0xa31   : > { %v1321_v35 = vpop.f32.mrb[22].mxu1 }
 0xa32   : > { %v1707_v36 = vpop.f32.mrb[23].mxu1  ;;  %v1324_v37 = vadd.f32 %v1319_v33, %v1171_v21 }
 0xa34   : > { %v1327_v0 = vsel %vm554_vm1, %v1324_v37, 0.0 }
 0xa35   : > { %1328 = vadd.xlane.f32.xlu0 %v1327_v0 }
 0xac2   : > { %v1329_v38 = vpop.xlane.xlu0 %1328 }
 0xac3   : > { %v1330_v39 = vmul.f32 0.03125, %v1329_v38 }
 0xac5   : > { %v1331_v40 = vsub.f32 %v1324_v37, %v1330_v39 }
 0xac7   : > { %v1332_v41 = vmul.f32 %v1331_v40, %v1331_v40 }
 0xac9   : > { %v1333_v42 = vsel %vm554_vm1, %v1332_v41, 0.0 }
 0xaca   : > { %1334 = vadd.xlane.f32.xlu1 %v1333_v42 }
 0xb57   : > { %v1335_v43 = vpop.xlane.xlu1 %1334 }
 0xb58   : > { %v1336_v44 = vmul.f32 0.03125, %v1335_v43 }
 0xb5a   : > { %v1337_v45 = vadd.f32 1e-06, %v1336_v44 }
 0xb5c   : > { %1895 = vrsqrt.f32 %v1337_v45 }
 0xb66   : > { %v1896_v46 = vpop.eup %1895 }
 0xb67   : > { %v1339_v48 = vmul.f32 %v1896_v46, %v1331_v40 }
 0xb69   : > { %v1346_v50 = vmul.f32 %v1588_v47, %v1339_v48 }
 0xb6b   : > { %v1353_v51 = vadd.f32 %v1589_v49, %v1346_v50 }
 0xb6d   : > { %1354 = vst.msk [vmem:[%s534_s14] sm:$0xff] %vm554_vm1, %v1353_v51 }
 0xb6e   : > { %2220 = shalt.err (!%p2217_p8)
}
 0xb6f   : > { %s2221_s26 = scalar_lea.hbm %s2851_s29, 128  ;;  %s2225_s14 = scalar_lea.hbm %s2943_s16, 256 }
 0xb70   : > { %p2222_p5 = scmp.ne.s32.totalorder %s2851_s29, %s2221_s26  ;;  %p2226_p9 = scmp.lt.u32.totalorder %s2851_s29, %s2943_s16 }
 0xb71   : > { %p2227_p12 = scmp.lt.u32.totalorder %s2225_s14, %s2221_s26  ;;  %p2229_p13 = scmp.lt.u32.totalorder %s2221_s26, %s2851_s29 }
 0xb72   : > { %p2223_p7 = pnand %p2222_p5, %p2944_p0 }
 0xb73   : > { %p2228_p1 = por %p2227_p12, %p2226_p9 }
 0xb74   : > { %p2224_p6 = pneg %p2223_p7 }
 0xb75   : > { %p2230_p2 = por %p2229_p13, %p2228_p1 }
 0xb77   : > { %p2231_p3 = pnand %p2230_p2, %p2224_p6 }
 0xb79   : > { %2234 = shalt.err (!%p2231_p3)
}
 0xb7a   : > { %1750 = dma.vmem_to_hbm [thread:$0]  (%p2944_p0), %s2853_s15, 128, %s2851_s29, %s1356_s21  }
 0xb7b PF: > { %s1381_s1 = sand.u32 1, %s2281_s17   ;;  %p2945_p4 = scmp.ne.s32.totalorder %s2928_s25, 0 }
 0xb7c   : > { %p2946_p10 = scmp.ge.s32.totalorder %s2293_s20, 2  ;;  %s1382_s23 = scalar_lea.sflag [#allocation4], %s1381_s1 }
 0xb7e   : > { %p1788_p11 = pnand %p2946_p10, %p2945_p4 }
 0xb80   : > { %2276 = dma.done.wait (!%p1788_p11), %s1382_s23, 128  }
 0xb81   : > { %2278 = vsyncadd (!%p1788_p11), %s1382_s23, 4294967168  ;;  %p29_p8 = scmp.ge.s32.totalorder %s2640_s27, 4   ;;  %s2947_s17 = smov %s2285_s18 }
 0xb82   : > { %s2948_s18 = smov %s2289_s19  ;;  %s2949_s19 = smov %s2651_s30 }
 0xb83   : > { %s2950_s20 = smov %s2640_s27  ;;  %31 = sbr.rel (!%p29_p8) target bundleno = 15 (0xf), region = 149 }
 0xb8a   :  { %1387 = vsyncpa [#allocation3], 1 }
 0xb8b   :  { %1389 = vsyncpa [#allocation3 + $0x1], 1 }
 0xb8c   :  { %1390 = vsyncpa [#allocation6], 1 }
 0xb8d   :  { %1391 = vsyncpa [#allocation9], 1 }
 0xb8e   :  { %1392 = vsyncpa [#allocation12], 1 }
 0xb8f   :  { %1393 = vsyncpa [#allocation15], 1 }
 0xb90   :  { %1394 = vsyncpa [#allocation18], 1 }
 0xb91   :  { %1395 = vsyncpa [#allocation4], 1 }
 0xb92   :  { %1397 = vsyncpa [#allocation4 + $0x1], 1 }

</bundles_post_ra>
